<compile_context>
chip_gen: v7x
topology: tpu7x:2x2x1
jax: 0.10.0
libtpu: 0.0.40
codegen_flags: <defaults>
</compile_context>

<pallas_src>
import functools
import numpy as np

import jax
import jax.numpy as jnp
from jax.experimental import pallas as pl
from jax.experimental.pallas import tpu as pltpu

_LANE = 128          # TPU lane width; feature / node dims padded to multiples of this
_NEG_SLOPE = 0.1     # LeakyReLU negative slope


# ----------------------------------------------------------------------------
# Small helpers
# ----------------------------------------------------------------------------
def _round_up(v, m):
    return ((v + m - 1) // m) * m


def _pad2(arr, rows, cols):
    pr, pc = rows - arr.shape[0], cols - arr.shape[1]
    if pr == 0 and pc == 0:
        return arr
    return jnp.pad(arr, ((0, pr), (0, pc)))


def _vmem_budget_bytes():
    """Generation-aware VMEM budget (leave headroom for compiler scratch)."""
    cap = None
    try:
        cap = int(pltpu.get_tpu_info().vmem_capacity_bytes)
    except Exception:
        cap = None
    if not cap:
        cap = 64 << 20                 # conservative default: v7x-sized VMEM
    if cap <= (64 << 20):
        return 52 << 20                # v7x: 64 MiB physical -> ~52 MiB usable
    return 100 << 20                   # v5e / v6e: 128 MiB physical


def _clamp_vmem(need, budget):
    return int(min(max(need + (4 << 20), 16 << 20), budget))


# ----------------------------------------------------------------------------
# Single-buffering of grid-invariant blocks (probe pl.Buffered(1) support once)
# ----------------------------------------------------------------------------
_BUFFERED1_OK = None


def _single_buffer_mode():
    global _BUFFERED1_OK
    if _BUFFERED1_OK is None:
        try:
            def _probe(x_ref, o_ref):
                o_ref[...] = x_ref[...]

            x = jnp.zeros((8, 128), jnp.float32)
            out = pl.pallas_call(
                _probe,
                out_shape=jax.ShapeDtypeStruct((16, 128), jnp.float32),
                grid=(2,),
                in_specs=[pl.BlockSpec((8, 128), lambda i: (0, 0),
                                       pipeline_mode=pl.Buffered(1))],
                out_specs=pl.BlockSpec((8, 128), lambda i: (i, 0)),
            )(x)
            jax.block_until_ready(out)
            _BUFFERED1_OK = True
        except Exception:
            _BUFFERED1_OK = False
    return pl.Buffered(1) if _BUFFERED1_OK else None


def _invariant_spec(shape):
    """BlockSpec for an operand that is identical at every grid step."""
    idx = lambda i, k: (0,) * len(shape)
    mode = _single_buffer_mode()
    if mode is None:
        return pl.BlockSpec(shape, idx)
    return pl.BlockSpec(shape, idx, pipeline_mode=mode)


# ----------------------------------------------------------------------------
# Fused single-call kernel (small/medium graphs): all K hops + proj + bias + act
# ----------------------------------------------------------------------------
def _make_fused_kernel(k_hops, project_first):
    def kernel(a_ref, x_ref, w_ref, b_ref, o_ref, h_ref):
        if project_first:
            h_ref[...] = jnp.dot(x_ref[...], w_ref[...],
                                 preferred_element_type=jnp.float32)
        else:
            h_ref[...] = x_ref[...].astype(jnp.float32)
        for _ in range(k_hops):                      # K is small & static -> unrolled
            h_ref[...] = jnp.dot(a_ref[...], h_ref[...].astype(a_ref.dtype),
                                 preferred_element_type=jnp.float32)
        y = h_ref[...]
        if not project_first:
            y = jnp.dot(y.astype(w_ref.dtype), w_ref[...],
                        preferred_element_type=jnp.float32)
        y = y + b_ref[...]
        o_ref[...] = jnp.where(y >= 0, y, _NEG_SLOPE * y).astype(o_ref.dtype)
    return kernel


# ----------------------------------------------------------------------------
# Tiled hop kernel: (row tile) x (contraction tile) grid, f32 VMEM accumulator
# ----------------------------------------------------------------------------
def _make_hop_kernel(project_in, project_out, epilogue):
    # ref order: a, h (or x), [w], [b], out, acc_scratch
    def kernel(*refs):
        a_ref, h_ref = refs[0], refs[1]
        idx = 2
        w_ref = None
        if project_in or project_out:
            w_ref = refs[idx]
            idx += 1
        b_ref = None
        if epilogue:
            b_ref = refs[idx]
            idx += 1
        o_ref, acc_ref = refs[idx], refs[idx + 1]

        k = pl.program_id(1)

        @pl.when(k == 0)
        def _init():
            acc_ref[...] = jnp.zeros_like(acc_ref)

        h = h_ref[...].astype(a_ref.dtype)
        if project_in:                               # fuse X @ W into the hop
            h = jnp.dot(h, w_ref[...],
                        preferred_element_type=jnp.float32).astype(a_ref.dtype)
        acc_ref[...] += jnp.dot(a_ref[...], h, preferred_element_type=jnp.float32)

        @pl.when(k == pl.num_programs(1) - 1)
        def _finalize():
            y = acc_ref[...]
            if project_out:                          # (A^K X) @ W
                y = jnp.dot(y.astype(w_ref.dtype), w_ref[...],
                            preferred_element_type=jnp.float32)
            if epilogue:                             # bias + LeakyReLU (f32 math)
                y = y + b_ref[...]
                y = jnp.where(y >= 0, y, _NEG_SLOPE * y)
            o_ref[...] = y.astype(o_ref.dtype)

    return kernel


def _hop_call(a_p, h, w, b, *, project_in, project_out, epilogue,
              tm, tk, n_pad, out_cols, out_dtype, acc_cols, budget):
    assert n_pad % tm == 0 and n_pad % tk == 0
    grid = (n_pad // tm, n_pad // tk)

    operands = [a_p, h]
    in_specs = [
        pl.BlockSpec((tm, tk), lambda i, k: (i, k)),           # A row/contraction tile
        pl.BlockSpec((tk, h.shape[1]), lambda i, k: (k, 0)),    # matching h / X rows
    ]
    need = (2 * tm * tk * a_p.dtype.itemsize
            + 2 * tk * h.shape[1] * h.dtype.itemsize)
    if project_in or project_out:
        operands.append(w)
        in_specs.append(_invariant_spec(w.shape))               # grid-invariant
        need += 2 * w.size * w.dtype.itemsize
    if epilogue:
        operands.append(b)
        in_specs.append(_invariant_spec(b.shape))               # grid-invariant
        need += 2 * b.size * b.dtype.itemsize
    need += 2 * tm * out_cols * np.dtype(out_dtype).itemsize    # output tile
    need += tm * acc_cols * 4                                   # f32 accumulator

    return pl.pallas_call(
        _make_hop_kernel(project_in, project_out, epilogue),
        out_shape=jax.ShapeDtypeStruct((n_pad, out_cols), out_dtype),
        grid=grid,
        in_specs=in_specs,
        out_specs=pl.BlockSpec((tm, out_cols), lambda i, k: (i, 0)),
        scratch_shapes=[pltpu.VMEM((tm, acc_cols), jnp.float32)],
        compiler_params=pltpu.CompilerParams(
            dimension_semantics=("parallel", "arbitrary"),
            vmem_limit_bytes=_clamp_vmem(need, budget),
        ),
    )(*operands)


def _choose_tiles(n_pad, h_cols_max, out_cols_max, acc_cols_max, w_bytes, budget):
    """Pick the largest (TM, TK) whose double-buffered working set fits the budget."""
    def working_set(tm, tk):
        return (2 * tm * tk * 2                  # A tile (bf16, double-buffered)
                + 2 * tk * h_cols_max * 4        # h / X tile (f32 worst case)
                + 2 * w_bytes                    # W + bias (conservatively doubled)
                + 2 * tm * out_cols_max * 4      # output tile
                + tm * acc_cols_max * 4          # accumulator scratch
                + (2 << 20))                     # headroom
    cands = [d for d in (512, 256, 128) if n_pad % d == 0]
    # keep >= 2 row tiles so both v7x TensorCores get work (harmless elsewhere)
    tms = [d for d in cands if n_pad // d >= 2] or cands
    for tm in tms:
        for tk in cands:
            if working_set(tm, tk) <= budget:
                return tm, tk
    return tms[-1], cands[-1]


# ----------------------------------------------------------------------------
# Encoder forward: SGConv(K) + LeakyReLU(0.1)
# ----------------------------------------------------------------------------
def encoder_forward(a_norm, x, w, b, *, k_hops=1,
                    compute_dtype=jnp.bfloat16,   # MXU operand dtype (A, X, W)
                    hop_dtype=jnp.float32,        # inter-hop h dtype in the tiled path
                    out_dtype=jnp.float32,
                    _force_tiled=False, _tile_override=None):
    """y = LeakyReLU(A_norm^K @ X @ W + b, slope=0.1)

    a_norm: (N, N) dense gcn-normalized adjacency (f32)
    x     : (N, C_in) node features
    w     : (C_in, C_out) projection weight (transpose of torch Linear.weight)
    b     : (1, C_out) or (C_out,) bias
    """
    assert k_hops >= 1, "SGConv K must be >= 1"
    n, c_in = x.shape
    c_out = w.shape[1]

    n_pad = _round_up(n, _LANE)
    c_in_pad = _round_up(c_in, _LANE)
    c_out_pad = _round_up(c_out, _LANE)

    budget = _vmem_budget_bytes()

    # MXU-shape heuristic: propagate at the narrower padded feature width.
    project_first = c_out_pad < c_in_pad
    h_cols = c_out_pad if project_first else c_in_pad

    a_p = _pad2(a_norm, n_pad, n_pad).astype(compute_dtype)
    x_p = _pad2(x, n_pad, c_in_pad).astype(compute_dtype)
    w_p = _pad2(w, c_in_pad, c_out_pad).astype(compute_dtype)
    b_p = _pad2(b.reshape(1, -1), 1, c_out_pad).astype(jnp.float32)

    # ---- fast path: everything resident -> one fused pallas_call for all K hops ----
    fused_need = (a_p.size * a_p.dtype.itemsize
                  + x_p.size * x_p.dtype.itemsize
                  + w_p.size * w_p.dtype.itemsize
                  + b_p.size * 4
                  + 2 * n_pad * h_cols * 4                              # h scratch + dot temp
                  + n_pad * c_out_pad * (np.dtype(out_dtype).itemsize + 4))
    if not _force_tiled and fused_need <= int(0.85 * budget):
        y = pl.pallas_call(
            _make_fused_kernel(k_hops, project_first),
            out_shape=jax.ShapeDtypeStruct((n_pad, c_out_pad), out_dtype),
            scratch_shapes=[pltpu.VMEM((n_pad, h_cols), jnp.float32)],
            compiler_params=pltpu.CompilerParams(
                vmem_limit_bytes=_clamp_vmem(fused_need, budget)),
        )(a_p, x_p, w_p, b_p)
        return y[:n, :c_out]

    # ---- general path: (row tile) x (contraction tile) grid with f32 accumulator ----
    if _tile_override is not None:
        tm, tk = _tile_override
    else:
        tm, tk = _choose_tiles(n_pad, c_in_pad, c_out_pad, h_cols,
                               w_p.size * w_p.dtype.itemsize + b_p.size * 4, budget)

    call = functools.partial(_hop_call, tm=tm, tk=tk, n_pad=n_pad, budget=budget)

    if project_first:
        if k_hops == 1:
            y = call(a_p, x_p, w_p, b_p, project_in=True, project_out=False,
                     epilogue=True, out_cols=c_out_pad, out_dtype=out_dtype,
                     acc_cols=c_out_pad)
        else:
            # First hop fuses X @ W (no HBM round trip of the projected features).
            h = call(a_p, x_p, w_p, None, project_in=True, project_out=False,
                     epilogue=False, out_cols=c_out_pad, out_dtype=hop_dtype,
                     acc_cols=c_out_pad)
            for _ in range(k_hops - 2):
                h = call(a_p, h, None, None, project_in=False, project_out=False,
                         epilogue=False, out_cols=c_out_pad, out_dtype=hop_dtype,
                         acc_cols=c_out_pad)
            y = call(a_p, h, None, b_p, project_in=False, project_out=False,
                     epilogue=True, out_cols=c_out_pad, out_dtype=out_dtype,
                     acc_cols=c_out_pad)
    else:
        h = x_p
        for _ in range(k_hops - 1):
            h = call(a_p, h, None, None, project_in=False, project_out=False,
                     epilogue=False, out_cols=c_in_pad, out_dtype=hop_dtype,
                     acc_cols=c_in_pad)
        y = call(a_p, h, w_p, b_p, project_in=False, project_out=True,
                 epilogue=True, out_cols=c_out_pad, out_dtype=out_dtype,
                 acc_cols=c_in_pad)

    return y[:n, :c_out]


# ----------------------------------------------------------------------------
# Glue: dense gcn-normalized adjacency from edge_index (PyG gcn_norm semantics)
# ----------------------------------------------------------------------------
def build_gcn_norm_adj(edge_index, num_nodes):
    src, dst = edge_index[0], edge_index[1]
    a = jnp.zeros((num_nodes, num_nodes), dtype=jnp.float32)
    a = a.at[dst, src].add(1.0)          # message flows source -> target; dups accumulate
    # add_remaining_self_loops: only nodes without an existing self-loop get one
    diag = jnp.diagonal(a)
    a = a + jnp.diag(jnp.where(diag == 0.0, 1.0, 0.0))
    deg = jnp.sum(a, axis=1)
    dinv = jnp.where(deg > 0, 1.0 / jnp.sqrt(deg), 0.0)
    return dinv[:, None] * a * dinv[None, :]


# ----------------------------------------------------------------------------
# Pure-JAX f32 reference
# ----------------------------------------------------------------------------
def encoder_reference(a_norm, x, w, b, *, k_hops=1):
    h = x
    for _ in range(k_hops):
        h = a_norm @ h
    y = h @ w + b
    return jnp.where(y >= 0, y, _NEG_SLOPE * y)


if __name__ == "__main__":
    def run_case(n, c_in, c_out, k_hops, e, seed, tol=3e-2, **kw):
        key = jax.random.PRNGKey(seed)
        kx, ksrc, kdst, kw_, kb = jax.random.split(key, 5)
        x = jax.random.normal(kx, (n, c_in), dtype=jnp.float32)
        src = jax.random.randint(ksrc, (e,), 0, n)
        dst = jax.random.randint(kdst, (e,), 0, n)
        edge_index = jnp.stack([src, dst], axis=0)              # [2, E]
        # nn.Linear(C_in, C_out, bias=True)-shaped parameters
        w = jax.random.normal(kw_, (c_in, c_out), dtype=jnp.float32) / jnp.sqrt(c_in)
        b = jax.random.normal(kb, (1, c_out), dtype=jnp.float32) * 0.01

        a_norm = build_gcn_norm_adj(edge_index, n)
        out = jax.block_until_ready(encoder_forward(a_norm, x, w, b, k_hops=k_hops, **kw))
        ref = encoder_reference(a_norm, x, w, b, k_hops=k_hops)

        assert out.shape == (n, c_out)
        err = jnp.max(jnp.abs(out - ref))
        assert jnp.allclose(out, ref, atol=tol, rtol=tol), f"mismatch, max abs err {err}"
        return out

    # Module defaults: SGConv(8, 512, K=1) + LeakyReLU(0.1)  -> fused single-call fast path
    run_case(n=16, c_in=8, c_out=512, k_hops=1, e=40, seed=0)
    # project-first branch (padded C_out < padded C_in), K=2   -> fused fast path
    run_case(n=20, c_in=200, c_out=64, k_hops=2, e=60, seed=0)
    # force the general K-tiled path (pl.when accumulator, fused X@W in first hop)
    run_case(n=200, c_in=200, c_out=64, k_hops=2, e=400, seed=1, tol=5e-2,
             _force_tiled=True, _tile_override=(128, 128))
    # project-last tiled path (propagate then project in the epilogue)
    run_case(n=200, c_in=64, c_out=256, k_hops=1, e=400, seed=2, tol=5e-2,
             _force_tiled=True, _tile_override=(128, 128))

    print("KERNEL_OK")
</pallas_src>

<mosaic_0001>
module attributes {stable_mosaic.version = 11 : i64} {
  func.func @kernel(%arg0: memref<128x128xbf16, #tpu.memory_space<vmem>>, %arg1: memref<128x128xbf16, #tpu.memory_space<vmem>>, %arg2: memref<128x512xbf16, #tpu.memory_space<vmem>>, %arg3: memref<1x512xf32, #tpu.memory_space<vmem>>, %arg4: memref<128x512xf32, #tpu.memory_space<vmem>>, %arg5: memref<128x128xf32, #tpu.memory_space<vmem>>) attributes {dimension_semantics = [], scalar_prefetch = 0 : i64, scratch_operands = 1 : i64, tpu.core_type = #tpu.core_type<tc>} {
    %c0 = arith.constant 0 : index
    %c0_0 = arith.constant 0 : index
    %0 = vector.load %arg1[%c0, %c0_0] : memref<128x128xbf16, #tpu.memory_space<vmem>>, vector<128x128xbf16>
    %1 = arith.extf %0 : vector<128x128xbf16> to vector<128x128xf32>
    %c0_1 = arith.constant 0 : index
    %c0_2 = arith.constant 0 : index
    %2 = vector.load %arg5[%c0_1, %c0_2] : memref<128x128xf32, #tpu.memory_space<vmem>>, vector<128x128xf32>
    tpu.vector_store %arg5[%c0_1, %c0_2], %1 {strides = array<i32>} : memref<128x128xf32, #tpu.memory_space<vmem>>, vector<128x128xf32>,
    %c0_3 = arith.constant 0 : index
    %c0_4 = arith.constant 0 : index
    %3 = vector.load %arg0[%c0_3, %c0_4] : memref<128x128xbf16, #tpu.memory_space<vmem>>, vector<128x128xbf16>
    %c0_5 = arith.constant 0 : index
    %c0_6 = arith.constant 0 : index
    %4 = vector.load %arg5[%c0_5, %c0_6] : memref<128x128xf32, #tpu.memory_space<vmem>>, vector<128x128xf32>
    %5 = arith.truncf %4 : vector<128x128xf32> to vector<128x128xbf16>
    %cst = arith.constant dense<0.000000e+00> : vector<128x128xf32>
    %6 = tpu.matmul %3, %5, %cst {dimension_numbers = #tpu.dot_dimension_numbers<[1], [0], [0], [1], [0, 0, 1, 1], [], []>} : vector<128x128xbf16>, vector<128x128xbf16>, vector<128x128xf32> -> vector<128x128xf32>
    %c0_7 = arith.constant 0 : index
    %c0_8 = arith.constant 0 : index
    %7 = vector.load %arg5[%c0_7, %c0_8] : memref<128x128xf32, #tpu.memory_space<vmem>>, vector<128x128xf32>
    tpu.vector_store %arg5[%c0_7, %c0_8], %6 {strides = array<i32>} : memref<128x128xf32, #tpu.memory_space<vmem>>, vector<128x128xf32>,
    %c0_9 = arith.constant 0 : index
    %c0_10 = arith.constant 0 : index
    %8 = vector.load %arg5[%c0_9, %c0_10] : memref<128x128xf32, #tpu.memory_space<vmem>>, vector<128x128xf32>
    %9 = arith.truncf %8 : vector<128x128xf32> to vector<128x128xbf16>
    %c0_11 = arith.constant 0 : index
    %c0_12 = arith.constant 0 : index
    %10 = vector.load %arg2[%c0_11, %c0_12] : memref<128x512xbf16, #tpu.memory_space<vmem>>, vector<128x512xbf16>
    %cst_13 = arith.constant dense<0.000000e+00> : vector<128x512xf32>
    %11 = tpu.matmul %9, %10, %cst_13 {dimension_numbers = #tpu.dot_dimension_numbers<[1], [0], [0], [1], [0, 0, 1, 1], [], []>} : vector<128x128xbf16>, vector<128x512xbf16>, vector<128x512xf32> -> vector<128x512xf32>
    %c0_14 = arith.constant 0 : index
    %c0_15 = arith.constant 0 : index
    %12 = vector.load %arg3[%c0_14, %c0_15] : memref<1x512xf32, #tpu.memory_space<vmem>>, vector<1x512xf32>
    %13 = vector.broadcast %12 : vector<1x512xf32> to vector<128x512xf32>
    %14 = arith.addf %11, %13 : vector<128x512xf32>
    %cst_16 = arith.constant 0.000000e+00 : f32
    %15 = vector.broadcast %cst_16 : f32 to vector<128x512xf32>
    %16 = arith.cmpf oge, %14, %15 : vector<128x512xf32>
    %cst_17 = arith.constant 1.000000e-01 : f32
    %17 = vector.broadcast %cst_17 : f32 to vector<128x512xf32>
    %18 = arith.mulf %17, %14 : vector<128x512xf32>
    %19 = arith.select %16, %14, %18 : vector<128x512xi1>, vector<128x512xf32>
    %c0_18 = arith.constant 0 : index
    %c0_19 = arith.constant 0 : index
    %20 = vector.load %arg4[%c0_18, %c0_19] : memref<128x512xf32, #tpu.memory_space<vmem>>, vector<128x512xf32>
    tpu.vector_store %arg4[%c0_18, %c0_19], %19 {strides = array<i32>} : memref<128x512xf32, #tpu.memory_space<vmem>>, vector<128x512xf32>,
    return
  }
}

</mosaic_0001>

<bundles_post_ra>
// kernel: tpu_custom_call.1
= control target key start
LH: loop header
LB: loop body
LE: loop exit
PB: predicated region body
PF: predicated region fallthrough
CT: control target
= control target key end

     0   :  { %9 = vsyncpa [#allocation4], 0  ;;  %s1589_s0 = inlined_call_operand.hbm [shape: bf16[128,128], index: 0, kind: input, shape index: {}]   ;;  %s1590_s1 = inlined_call_operand.hbm [shape: bf16[128,128], index: 1, kind: input, shape index: {}]   ;;  %s1591_s2 = inlined_call_operand.hbm [shape: bf16[128,512], index: 2, kind: input, shape index: {}]   ;;  %s1592_s3 = inlined_call_operand.vmem [shape: f32[1,512], index: 3, kind: input, shape index: {}]   ;;  %s1593_s4 = inlined_call_operand.hbm [shape: f32[128,512], index: 4, kind: output, shape index: {}]  }
   0x1   :  { %10 = vsyncpa [#allocation7], 0 }
   0x2   :  { %11 = vsyncpa [#allocation5], 0  ;;  %s1351_s15 = smov [#allocation6]   ;;  %s1352_s17 = smov [#allocation3]  }
   0x3   :  { %s29_s16 = sshll.u32 %s1351_s15, 4  ;;  %s17_s18 = sshll.u32 %s1352_s17, 4  ;;  %s30_s16 = int_to_ptr.vmem [resolvable:$true] %s29_s16  ;;  %s1387_s18 = int_to_ptr.vmem [resolvable:$true] %s17_s18 }
   0x4   :  { %s1257_s21 = scalar_lea.hbm %s1590_s1, 1024 }
   0x5   :  { %p1258_p0 = scmp.ne.s32.totalorder %s1590_s1, %s1257_s21  ;;  %p1261_p1 = scmp.lt.u32.totalorder %s1257_s21, %s1590_s1 }
   0x7   :  { %p1263_p2 = pnand %p1261_p1, %p1258_p0 }
   0x9   :  { %1266 = shalt.err (!%p1263_p2)
}
   0xa   :  { %s1267_s26 = scalar_lea.vmem %s30_s16, 1024  ;;  %p1272_p4 = scmp.lt.s32.totalorder %s30_s16, %s30_s16 }
   0xb   :  { %p1268_p3 = scmp.ne.s32.totalorder %s30_s16, %s1267_s26  ;;  %p1273_p5 = scmp.lt.s32.totalorder %s1267_s26, %s1267_s26 }
   0xd   :  { %p1274_p6 = por %p1273_p5, %p1272_p4 }
   0xf   :  { %p1275_p7 = pnand %p1274_p6, %p1268_p3 }
  0x11   :  { %1278 = shalt.err (!%p1275_p7)
}
  0x12   :  { %s1353_s27 = smov 64   ;;  %s1354_s28 = smov 4  }
  0x13   :  { %35 = dma.hbm_to_vmem [thread:$0]  %s1590_s1, 1024, %s30_s16, [#allocation7], %s1353_s27, %s1353_s27, %s1354_s28  }
  0x14   :  { %s1279_s7 = scalar_lea.hbm %s1589_s0, 1024 }
  0x15   :  { %p1280_p8 = scmp.ne.s32.totalorder %s1589_s0, %s1279_s7  ;;  %p1283_p9 = scmp.lt.u32.totalorder %s1279_s7, %s1589_s0 }
  0x17   :  { %p1285_p10 = pnand %p1283_p9, %p1280_p8 }
  0x19   :  { %1288 = shalt.err (!%p1285_p10)
}
  0x1a   :  { %s1289_s12 = scalar_lea.vmem %s1387_s18, 1024  ;;  %p1294_p12 = scmp.lt.s32.totalorder %s1387_s18, %s1387_s18 }
  0x1b   :  { %p1290_p11 = scmp.ne.s32.totalorder %s1387_s18, %s1289_s12  ;;  %p1295_p13 = scmp.lt.s32.totalorder %s1289_s12, %s1289_s12 }
  0x1d   :  { %p1296_p0 = por %p1295_p13, %p1294_p12 }
  0x1f   :  { %p1297_p1 = pnand %p1296_p0, %p1290_p11 }
  0x21   :  { %1300 = shalt.err (!%p1297_p1)
}
  0x22   :  { %23 = dma.hbm_to_vmem [thread:$0]  %s1589_s0, 1024, %s1387_s18, [#allocation4], %s1353_s27, %s1353_s27, %s1354_s28  }
  0x23   :  { %s1355_s14 = smov [#allocation8]   ;;  %s1301_s19 = scalar_lea.hbm %s1591_s2, 4096 }
  0x24   :  { %s41_s15 = sshll.u32 %s1355_s14, 4  ;;  %p1302_p2 = scmp.ne.s32.totalorder %s1591_s2, %s1301_s19  ;;  %s42_s15 = int_to_ptr.vmem [resolvable:$true] %s41_s15 }
  0x25   :  { %p1305_p3 = scmp.lt.u32.totalorder %s1301_s19, %s1591_s2 }
  0x27   :  { %p1307_p4 = pnand %p1305_p3, %p1302_p2 }
  0x29   :  { %1310 = shalt.err (!%p1307_p4)
}
  0x2a   :  { %s1311_s24 = scalar_lea.vmem %s42_s15, 4096  ;;  %p1316_p6 = scmp.lt.s32.totalorder %s42_s15, %s42_s15 }
  0x2b   :  { %p1312_p5 = scmp.ne.s32.totalorder %s42_s15, %s1311_s24  ;;  %p1317_p7 = scmp.lt.s32.totalorder %s1311_s24, %s1311_s24 }
  0x2d   :  { %p1318_p8 = por %p1317_p7, %p1316_p6 }
  0x2f   :  { %p1319_p9 = pnand %p1318_p8, %p1312_p5 }
  0x31   :  { %1322 = shalt.err (!%p1319_p9)
}
  0x32   :  { %s1356_s0 = smov 256   ;;  %s1357_s18 = smov 16  }
  0x33   :  { %47 = dma.hbm_to_vmem [thread:$0]  %s1591_s2, 4096, %s42_s15, [#allocation7], %s1356_s0, %s1356_s0, %s1357_s18  }
  0x34   :  { %1345 = dma.done.wait [#allocation4], 1024  }
  0x35   :  { %1346 = vsyncadd [#allocation4], 4294966272 }
  0x36   :  { %1347 = dma.done.wait [#allocation7], 5120  }
  0x37   :  { %1348 = vsyncadd [#allocation7], 4294962176  ;;  %v1088_v0 = vld [vmem:[#allocation6] sm:$0xff]   ;;  %v1119_v1 = vld [vmem:[#allocation6 + $0x8] sm:$0xff]   ;;  %v1358_v48 = vmov 0  }
  0x38   :  { %1142 = vmatprep.subr.bf16.mxu0 %v1088_v0  ;;  %v1201_v2 = vld [vmem:[#allocation3] sm:$0xff]   ;;  %v1120_v3 = vld [vmem:[#allocation6 + $0x10] sm:$0xff]   ;;  %v1121_v4 = vld [vmem:[#allocation6 + $0x18] sm:$0xff]   ;;  %579 = vmatprep.mubr.bf16.mxu1 %v1358_v48 }
  0x39   :  { %1143 = vmatpush3.bf16.msra.mxu0 %v1088_v0  ;;  %1158 = vmatprep.mubr.bf16.mxu0 %v1201_v2  ;;  %v1209_v5 = vld [vmem:[#allocation8 + $0x4] ss:$16 sps:$4 sm:$0xff]   ;;  %v1211_v6 = vld [vmem:[#allocation8] ss:$16 sps:$4 sm:$0xff]   ;;  %v1123_v10 = vld [vmem:[#allocation6 + $0x28] sm:$0xff]  }
  0x3a   :  { %1144 = vmatprep.subr.bf16.mxu0 %v1119_v1  ;;  %v1122_v7 = vld [vmem:[#allocation6 + $0x20] sm:$0xff]   ;;  %547 = vmatprep.subr.bf16.mxu1 %v1209_v5  ;;  %v1124_v14 = vld [vmem:[#allocation6 + $0x30] sm:$0xff]   ;;  %v1125_v17 = vld [vmem:[#allocation6 + $0x38] sm:$0xff]  }
  0x3b   :  { %548 = vmatpush1.bf16.msra.mxu1 %v1211_v6  ;;  %v1215_v8 = vld [vmem:[#allocation8 + $0x24] ss:$16 sps:$4 sm:$0xff]   ;;  %v1217_v9 = vld [vmem:[#allocation8 + $0x20] ss:$16 sps:$4 sm:$0xff]   ;;  %v1214_v19 = vld [vmem:[#allocation8 + $0xc] ss:$16 sps:$4 sm:$0xff]  }
  0x3c   :  { %549 = vmatprep.subr.bf16.mxu1 %v1215_v8  ;;  %v1221_v11 = vld [vmem:[#allocation8 + $0x44] ss:$16 sps:$4 sm:$0xff]   ;;  %v1223_v12 = vld [vmem:[#allocation8 + $0x40] ss:$16 sps:$4 sm:$0xff]   ;;  %v1202_v21 = vld [vmem:[#allocation3 + $0x8] sm:$0xff]  }
  0x3d   :  { %1145 = vmatpush3.bf16.msra.mxu0 %v1119_v1  ;;  %v1227_v13 = vld [vmem:[#allocation8 + $0x64] ss:$16 sps:$4 sm:$0xff]   ;;  %v1229_v15 = vld [vmem:[#allocation8 + $0x60] ss:$16 sps:$4 sm:$0xff]   ;;  %v1430_v23 = vld [vmem:[#allocation8 + $0x8] ss:$16 sps:$4 sm:$0xff]  }
  0x3e   :  { %1146 = vmatprep.subr.bf16.mxu0 %v1120_v3  ;;  %v1233_v16 = vld [vmem:[#allocation8 + $0x84] ss:$16 sps:$4 sm:$0xff]   ;;  %v1235_v18 = vld [vmem:[#allocation8 + $0x80] ss:$16 sps:$4 sm:$0xff]   ;;  %v1432_v24 = vld [vmem:[#allocation8 + $0x2c] ss:$16 sps:$4 sm:$0xff]  }
  0x3f   :  { %550 = vmatpush1.bf16.msra.mxu1 %v1217_v9  ;;  %v1239_v20 = vld [vmem:[#allocation8 + $0xa4] ss:$16 sps:$4 sm:$0xff]   ;;  %v1241_v25 = vld [vmem:[#allocation8 + $0xa0] ss:$16 sps:$4 sm:$0xff]   ;;  %v1435_v27 = vld [vmem:[#allocation8 + $0x28] ss:$16 sps:$4 sm:$0xff]   ;;  %v367_v9 = vlaneseq }
  0x40   :  { %551 = vmatprep.subr.bf16.mxu1 %v1221_v11  ;;  %v1203_v22 = vld [vmem:[#allocation3 + $0x10] sm:$0xff]   ;;  %v1438_v28 = vld [vmem:[#allocation8 + $0x4c] ss:$16 sps:$4 sm:$0xff]   ;;  %v1205_v31 = vld [vmem:[#allocation3 + $0x20] sm:$0xff]  }
  0x41   :  { %1147 = vmatpush3.bf16.msra.mxu0 %v1120_v3  ;;  %v1245_v26 = vld [vmem:[#allocation8 + $0xc4] ss:$16 sps:$4 sm:$0xff]   ;;  %v1247_v29 = vld [vmem:[#allocation8 + $0xc0] ss:$16 sps:$4 sm:$0xff]   ;;  %v1204_v30 = vld [vmem:[#allocation3 + $0x18] sm:$0xff]  }
  0x42   :  { %1148 = vmatprep.subr.bf16.mxu0 %v1121_v4  ;;  %v1441_v32 = vld [vmem:[#allocation8 + $0x48] ss:$16 sps:$4 sm:$0xff]   ;;  %v1444_v33 = vld [vmem:[#allocation8 + $0x6c] ss:$16 sps:$4 sm:$0xff]   ;;  %v1207_v37 = vld [vmem:[#allocation3 + $0x30] sm:$0xff]  }
  0x43   :  { %552 = vmatpush1.bf16.msra.mxu1 %v1223_v12  ;;  %v1447_v34 = vld [vmem:[#allocation8 + $0x68] ss:$16 sps:$4 sm:$0xff]   ;;  %v1450_v35 = vld [vmem:[#allocation8 + $0x8c] ss:$16 sps:$4 sm:$0xff]   ;;  %v1251_v44 = vld [vmem:[#allocation8 + $0xe4] ss:$16 sps:$4 sm:$0xff]  }
  0x44   :  { %553 = vmatprep.subr.bf16.mxu1 %v1227_v13  ;;  %v1206_v36 = vld [vmem:[#allocation3 + $0x28] sm:$0xff]   ;;  %v1208_v42 = vld [vmem:[#allocation3 + $0x38] sm:$0xff]   ;;  %v1253_v46 = vld [vmem:[#allocation8 + $0xe0] ss:$16 sps:$4 sm:$0xff]  }
  0x45   :  { %1149 = vmatpush3.bf16.msra.mxu0 %v1121_v4  ;;  %v1453_v38 = vld [vmem:[#allocation8 + $0x88] ss:$16 sps:$4 sm:$0xff]   ;;  %v1456_v39 = vld [vmem:[#allocation8 + $0xac] ss:$16 sps:$4 sm:$0xff]   ;;  %v365_v13 = vld [vmem:[%s1592_s3] sm:$0xf] }
  0x46   :  { %1150 = vmatprep.subr.bf16.mxu0 %v1122_v7  ;;  %v1459_v40 = vld [vmem:[#allocation8 + $0xa8] ss:$16 sps:$4 sm:$0xff]   ;;  %v1462_v41 = vld [vmem:[#allocation8 + $0xcc] ss:$16 sps:$4 sm:$0xff]   ;;  %s1359_s3 = smov [#allocation9]  }
  0x47   :  { %554 = vmatpush1.bf16.msra.mxu1 %v1229_v15  ;;  %v1465_v43 = vld [vmem:[#allocation8 + $0xc8] ss:$16 sps:$4 sm:$0xff]   ;;  %v1469_v45 = vld [vmem:[#allocation8 + $0xec] ss:$16 sps:$4 sm:$0xff]   ;;  %s1034_s28 = sshll.u32 %s1359_s3, 4  ;;  %s1035_s28 = int_to_ptr.vmem [resolvable:$true] %s1034_s28 }
  0x48   :  { %555 = vmatprep.subr.bf16.mxu1 %v1233_v16  ;;  %v1254_v47 = vld [vmem:[#allocation8 + $0xe8] ss:$16 sps:$4 sm:$0xff]   ;;  %s1323_s29 = scalar_lea.vmem %s1035_s28, 8192  ;;  %p1328_p11 = scmp.lt.s32.totalorder %s1035_s28, %s1035_s28 }
  0x49   :  { %1151 = vmatpush3.bf16.msra.mxu0 %v1122_v7  ;;  %p1324_p10 = scmp.ne.s32.totalorder %s1035_s28, %s1323_s29  ;;  %p1329_p12 = scmp.lt.s32.totalorder %s1323_s29, %s1323_s29 }
  0x4a   :  { %1152 = vmatprep.subr.bf16.mxu0 %v1123_v10 }
  0x4b   :  { %556 = vmatpush1.bf16.msra.mxu1 %v1235_v18  ;;  %p1330_p13 = por %p1329_p12, %p1328_p11 }
  0x4c   :  { %557 = vmatprep.subr.bf16.mxu1 %v1239_v20 }
  0x4d   :  { %1153 = vmatpush3.bf16.msra.mxu0 %v1123_v10  ;;  %v368_v10 = vshrl.u32 %v367_v9, 7  ;;  %p1331_p0 = pnand %p1330_p13, %p1324_p10 }
  0x4e   :  { %1154 = vmatprep.subr.bf16.mxu0 %v1124_v14 }
  0x4f   :  { %558 = vmatpush1.bf16.msra.mxu1 %v1241_v25  ;;  %v369_v11 = vsub.s32 0, %v368_v10  ;;  %v377_v12 = vsub.s32 2, %v368_v10  ;;  %v381_v15 = vsub.s32 3, %v368_v10 }
  0x50   :  { %559 = vmatprep.subr.bf16.mxu1 %v1245_v26 }
  0x51   :  { %1155 = vmatpush3.bf16.msra.mxu0 %v1124_v14  ;;  %v373_v14 = vsub.s32 1, %v368_v10  ;;  %v1505_v16 = vrot.slane %v365_v13, %v369_v11 }
  0x52   :  { %1156 = vmatprep.subr.bf16.mxu0 %v1125_v17 }
  0x53   :  { %560 = vmatpush1.bf16.msra.mxu1 %v1247_v29  ;;  %v1509_v18 = vrot.slane %v365_v13, %v373_v14 }
  0x54   :  { %561 = vmatprep.subr.bf16.mxu1 %v1251_v44 }
  0x55   :  { %1157 = vmatpush3.bf16.msra.mxu0 %v1125_v17  ;;  %v1507_v17 = vrot.slane %v365_v13, %v377_v12 }
  0x56   :  { %660 = vmatprep.subr.bf16.mxu0 %v1214_v19 }
  0x57   :  { %562 = vmatpush1.bf16.msra.mxu1 %v1253_v46 }
  0x58   :  { %1159 = vmatmul.mubr.bf16.vlgmr.msra.gmra.mrb[0].mxu0 %v1202_v21  ;;  %1174 = vmatprep.subr.bf16.mxu1 %v1214_v19  ;;  %v1511_v19 = vrot.slane %v365_v13, %v381_v15 }
  0x59   :  { %1162 = vmatprep.mubr.bf16.mxu0 %v1203_v22  ;;  %661 = vmatpush1.bf16.msra.mxu0 %v1430_v23 }
  0x5a   :  { %662 = vmatprep.subr.bf16.mxu0 %v1432_v24 }
  0x5d   :  { %663 = vmatpush1.bf16.msra.mxu0 %v1435_v27 }
  0x5e   :  { %664 = vmatprep.subr.bf16.mxu0 %v1438_v28 }
  0x60   :  { %1163 = vmatmul.mubr.bf16.gmra.mrb[4].mxu0 %v1204_v30 }
  0x61   :  { %1166 = vmatprep.mubr.bf16.mxu0 %v1205_v31  ;;  %665 = vmatpush1.bf16.msra.mxu0 %v1441_v32 }
  0x62   :  { %666 = vmatprep.subr.bf16.mxu0 %v1444_v33 }
  0x65   :  { %667 = vmatpush1.bf16.msra.mxu0 %v1447_v34 }
  0x66   :  { %668 = vmatprep.subr.bf16.mxu0 %v1450_v35 }
  0x68   :  { %1167 = vmatmul.mubr.bf16.gmra.mrb[8].mxu0 %v1206_v36 }
  0x69   :  { %1170 = vmatprep.mubr.bf16.mxu0 %v1207_v37  ;;  %669 = vmatpush1.bf16.msra.mxu0 %v1453_v38 }
  0x6a   :  { %670 = vmatprep.subr.bf16.mxu0 %v1456_v39 }
  0x6d   :  { %671 = vmatpush1.bf16.msra.mxu0 %v1459_v40 }
  0x6e   :  { %672 = vmatprep.subr.bf16.mxu0 %v1462_v41 }
  0x70   :  { %1171 = vmatmul.mubr.bf16.gmra.mrb[12].mxu0 %v1208_v42 }
  0x71   :  { %673 = vmatpush1.bf16.msra.mxu0 %v1465_v43  ;;  %692 = vmatprep.mubr.bf16.mxu0 %v1358_v48 }
  0x72   :  { %674 = vmatprep.subr.bf16.mxu0 %v1469_v45 }
  0x75   :  { %675 = vmatpush1.bf16.msra.mxu0 %v1254_v47 }
 0x12b   :  { %v1160_v49 = vpop.f32.mrb[0].mxu0 }
 0x12c   :  { %v230_v50 = vpop.f32.mrb[1].mxu0 }
 0x12d   :  { %v1161_v51 = vpop.f32.mrb[2].mxu0 }
 0x12e   :  { %v326_v52 = vpack.c.bf16 %v1161_v51, %v1160_v49  ;;  %v233_v53 = vpop.f32.mrb[3].mxu0 }
 0x12f   :  { %v325_v54 = vpack.c.bf16 %v233_v53, %v230_v50 }
 0x131   :  { %580 = vmatmul.mubr.bf16.vlgmr.msra.gmra.mrb[0].mxu1 %v325_v54  ;;  %693 = vmatmul.mubr.bf16.vlgmr.msra.gmra.mrb[16].mxu0 %v325_v54 }
 0x132   :  { %1182 = vmatpush1.bf16.msra.mxu1 %v1430_v23  ;;  %589 = vmatprep.mubr.bf16.mxu1 %v1358_v48 }
 0x133   :  { %v1164_v55 = vpop.f32.mrb[4].mxu0  ;;  %1175 = vmatprep.subr.bf16.mxu1 %v1432_v24  ;;  %702 = vmatprep.mubr.bf16.mxu0 %v1358_v48 }
 0x134   :  { %v246_v56 = vpop.f32.mrb[5].mxu0 }
 0x135   :  { %v1165_v57 = vpop.f32.mrb[6].mxu0 }
 0x136   :  { %1183 = vmatpush1.bf16.msra.mxu1 %v1435_v27  ;;  %v328_v58 = vpack.c.bf16 %v1165_v57, %v1164_v55  ;;  %v249_v59 = vpop.f32.mrb[7].mxu0 }
 0x137   :  { %v327_v60 = vpack.c.bf16 %v249_v59, %v246_v56  ;;  %1176 = vmatprep.subr.bf16.mxu1 %v1438_v28 }
 0x139   :  { %590 = vmatmul.mubr.bf16.gmra.mrb[4].mxu1 %v326_v52  ;;  %703 = vmatmul.mubr.bf16.gmra.mrb[20].mxu0 %v326_v52 }
 0x13a   :  { %599 = vmatprep.mubr.bf16.mxu1 %v1358_v48  ;;  %712 = vmatprep.mubr.bf16.mxu0 %v1358_v48 }
 0x13b   :  { %1184 = vmatpush1.bf16.msra.mxu1 %v1441_v32  ;;  %v1168_v61 = vpop.f32.mrb[8].mxu0 }
 0x13c   :  { %1177 = vmatprep.subr.bf16.mxu1 %v1444_v33  ;;  %v262_v62 = vpop.f32.mrb[9].mxu0 }
 0x13d   :  { %v1169_v63 = vpop.f32.mrb[10].mxu0 }
 0x13e   :  { %v330_v0 = vpack.c.bf16 %v1169_v63, %v1168_v61  ;;  %v265_v1 = vpop.f32.mrb[11].mxu0 }
 0x13f   :  { %1185 = vmatpush1.bf16.msra.mxu1 %v1447_v34  ;;  %v329_v2 = vpack.c.bf16 %v265_v1, %v262_v62 }
 0x140   :  { %1178 = vmatprep.subr.bf16.mxu1 %v1450_v35 }
 0x141   :  { %600 = vmatmul.mubr.bf16.gmra.mrb[8].mxu1 %v327_v60  ;;  %713 = vmatmul.mubr.bf16.gmra.mrb[24].mxu0 %v327_v60 }
 0x142   :  { %609 = vmatprep.mubr.bf16.mxu1 %v1358_v48  ;;  %722 = vmatprep.mubr.bf16.mxu0 %v1358_v48 }
 0x143   :  { %1186 = vmatpush1.bf16.msra.mxu1 %v1453_v38  ;;  %v1172_v3 = vpop.f32.mrb[12].mxu0 }
 0x144   :  { %1179 = vmatprep.subr.bf16.mxu1 %v1456_v39  ;;  %v278_v4 = vpop.f32.mrb[13].mxu0 }
 0x145   :  { %v1173_v5 = vpop.f32.mrb[14].mxu0 }
 0x146   :  { %v332_v6 = vpack.c.bf16 %v1173_v5, %v1172_v3  ;;  %v281_v7 = vpop.f32.mrb[15].mxu0 }
 0x147   :  { %1187 = vmatpush1.bf16.msra.mxu1 %v1459_v40  ;;  %v331_v8 = vpack.c.bf16 %v281_v7, %v278_v4 }
 0x148   :  { %1180 = vmatprep.subr.bf16.mxu1 %v1462_v41 }
 0x149   :  { %610 = vmatmul.mubr.bf16.gmra.mrb[12].mxu1 %v328_v58  ;;  %723 = vmatmul.mubr.bf16.gmra.mrb[28].mxu0 %v328_v58 }
 0x14a   :  { %619 = vmatprep.mubr.bf16.mxu1 %v1358_v48  ;;  %732 = vmatprep.mubr.bf16.mxu0 %v1358_v48 }
 0x14b   :  { %1188 = vmatpush1.bf16.msra.mxu1 %v1465_v43 }
 0x14c   :  { %1181 = vmatprep.subr.bf16.mxu1 %v1469_v45 }
 0x14f   :  { %1189 = vmatpush1.bf16.msra.mxu1 %v1254_v47 }
 0x151   :  { %620 = vmatmul.mubr.bf16.gmra.mrb[16].mxu1 %v329_v2  ;;  %733 = vmatmul.mubr.bf16.gmra.mrb[32].mxu0 %v329_v2 }
 0x152   :  { %629 = vmatprep.mubr.bf16.mxu1 %v1358_v48  ;;  %742 = vmatprep.mubr.bf16.mxu0 %v1358_v48 }
 0x159   :  { %630 = vmatmul.mubr.bf16.gmra.mrb[20].mxu1 %v330_v0  ;;  %743 = vmatmul.mubr.bf16.gmra.mrb[36].mxu0 %v330_v0 }
 0x15a   :  { %639 = vmatprep.mubr.bf16.mxu1 %v1358_v48 }
 0x161   :  { %640 = vmatmul.mubr.bf16.gmra.mrb[24].mxu1 %v331_v8 }
 0x162   :  { %649 = vmatprep.mubr.bf16.mxu1 %v1358_v48 }
 0x169   :  { %650 = vmatmul.mubr.bf16.gmra.mrb[28].mxu1 %v332_v6 }
 0x16a   :  { %752 = vmatprep.mubr.bf16.mxu1 %v1358_v48 }
 0x171   :  { %753 = vmatmul.mubr.bf16.vlgmr.msra.gmra.mrb[32].mxu1 %v331_v8 }
 0x172   :  { %762 = vmatprep.mubr.bf16.mxu1 %v1358_v48 }
 0x179   :  { %763 = vmatmul.mubr.bf16.gmra.mrb[36].mxu1 %v332_v6 }
 0x204   :  { %v581_v20 = vpop.f32.mrb[0].mxu1  ;;  %v694_v21 = vpop.f32.mrb[16].mxu0 }
 0x205   :  { %v582_v22 = vadd.f32 %v581_v20, %v1505_v16  ;;  %v695_v23 = vadd.f32 %v694_v21, %v1507_v17  ;;  %v583_v24 = vpop.f32.mrb[1].mxu1  ;;  %v696_v25 = vpop.f32.mrb[17].mxu0 }
 0x206   :  { %v584_v26 = vadd.f32 %v583_v24, %v1509_v18  ;;  %v697_v27 = vadd.f32 %v696_v25, %v1511_v19  ;;  %v585_v28 = vpop.f32.mrb[2].mxu1  ;;  %v698_v29 = vpop.f32.mrb[18].mxu0 }
 0x207   :  { %vm773_vm0 = vcmp.ge.f32.partialorder %v582_v22, 0.0  ;;  %v837_v30 = vmul.f32 0.1, %v582_v22  ;;  %vm775_vm1 = vcmp.ge.f32.partialorder %v695_v23, 0.0  ;;  %v839_v31 = vmul.f32 0.1, %v695_v23 }
 0x208   :  { %vm774_vm2 = vcmp.ge.f32.partialorder %v584_v26, 0.0  ;;  %v838_v32 = vmul.f32 0.1, %v584_v26  ;;  %vm776_vm3 = vcmp.ge.f32.partialorder %v697_v27, 0.0  ;;  %v840_v33 = vmul.f32 0.1, %v697_v27 }
 0x209   :  { %v901_v34 = vsel %vm773_vm0, %v582_v22, %v837_v30  ;;  %v903_v35 = vsel %vm775_vm1, %v695_v23, %v839_v31  ;;  %v586_v36 = vadd.f32 %v585_v28, %v1505_v16  ;;  %v699_v37 = vadd.f32 %v698_v29, %v1507_v17  ;;  %v587_v38 = vpop.f32.mrb[3].mxu1  ;;  %v700_v39 = vpop.f32.mrb[19].mxu0 }
 0x20a   :  { %965 = vst [vmem:[#allocation9] sm:$0xff] %v901_v34  ;;  %967 = vst [vmem:[#allocation9 + $0x10] sm:$0xff] %v903_v35  ;;  %v902_v40 = vsel %vm774_vm2, %v584_v26, %v838_v32  ;;  %v904_v41 = vsel %vm776_vm3, %v697_v27, %v840_v33  ;;  %v588_v42 = vadd.f32 %v587_v38, %v1509_v18 }
 0x20b   :  { %v701_v43 = vadd.f32 %v700_v39, %v1511_v19  ;;  %966 = vst [vmem:[#allocation9 + $0x8] sm:$0xff] %v902_v40  ;;  %968 = vst [vmem:[#allocation9 + $0x18] sm:$0xff] %v904_v41  ;;  %vm777_vm4 = vcmp.ge.f32.partialorder %v586_v36, 0.0  ;;  %v841_v44 = vmul.f32 0.1, %v586_v36  ;;  %vm779_vm5 = vcmp.ge.f32.partialorder %v699_v37, 0.0 }
 0x20c   :  { %v843_v45 = vmul.f32 0.1, %v699_v37  ;;  %vm778_vm6 = vcmp.ge.f32.partialorder %v588_v42, 0.0  ;;  %v842_v46 = vmul.f32 0.1, %v588_v42  ;;  %v591_v50 = vpop.f32.mrb[4].mxu1 }
 0x20d   :  { %vm780_vm7 = vcmp.ge.f32.partialorder %v701_v43, 0.0  ;;  %v844_v47 = vmul.f32 0.1, %v701_v43  ;;  %v905_v48 = vsel %vm777_vm4, %v586_v36, %v841_v44  ;;  %v704_v51 = vpop.f32.mrb[20].mxu0  ;;  %v592_v54 = vadd.f32 %v591_v50, %v1505_v16  ;;  %v593_v56 = vpop.f32.mrb[5].mxu1 }
 0x20e   :  { %v907_v49 = vsel %vm779_vm5, %v699_v37, %v843_v45  ;;  %969 = vst [vmem:[#allocation9 + $0x20] sm:$0xff] %v905_v48  ;;  %v906_v52 = vsel %vm778_vm6, %v588_v42, %v842_v46  ;;  %v705_v55 = vadd.f32 %v704_v51, %v1507_v17  ;;  %v706_v57 = vpop.f32.mrb[21].mxu0  ;;  %v594_v58 = vadd.f32 %v593_v56, %v1509_v18  ;;  %v595_v60 = vpop.f32.mrb[6].mxu1 }
 0x20f   :  { %971 = vst [vmem:[#allocation9 + $0x30] sm:$0xff] %v907_v49  ;;  %v908_v53 = vsel %vm780_vm7, %v701_v43, %v844_v47  ;;  %970 = vst [vmem:[#allocation9 + $0x28] sm:$0xff] %v906_v52  ;;  %v707_v59 = vadd.f32 %v706_v57, %v1511_v19  ;;  %v708_v61 = vpop.f32.mrb[22].mxu0  ;;  %vm781_vm8 = vcmp.ge.f32.partialorder %v592_v54, 0.0  ;;  %v845_v62 = vmul.f32 0.1, %v592_v54 }
 0x210   :  { %972 = vst [vmem:[#allocation9 + $0x38] sm:$0xff] %v908_v53  ;;  %vm783_vm9 = vcmp.ge.f32.partialorder %v705_v55, 0.0  ;;  %v847_v63 = vmul.f32 0.1, %v705_v55  ;;  %vm782_vm10 = vcmp.ge.f32.partialorder %v594_v58, 0.0  ;;  %v596_v4 = vadd.f32 %v595_v60, %v1505_v16  ;;  %v597_v6 = vpop.f32.mrb[7].mxu1 }
 0x211   :  { %v846_v0 = vmul.f32 0.1, %v594_v58  ;;  %vm784_vm11 = vcmp.ge.f32.partialorder %v707_v59, 0.0  ;;  %v848_v1 = vmul.f32 0.1, %v707_v59  ;;  %v909_v2 = vsel %vm781_vm8, %v592_v54, %v845_v62  ;;  %v710_v7 = vpop.f32.mrb[23].mxu0 }
 0x212   :  { %v911_v3 = vsel %vm783_vm9, %v705_v55, %v847_v63  ;;  %v709_v5 = vadd.f32 %v708_v61, %v1507_v17  ;;  %973 = vst [vmem:[#allocation9 + $0x40] sm:$0xff] %v909_v2  ;;  %v598_v10 = vadd.f32 %v597_v6, %v1509_v18  ;;  %v711_v11 = vadd.f32 %v710_v7, %v1511_v19 }
 0x213   :  { %975 = vst [vmem:[#allocation9 + $0x50] sm:$0xff] %v911_v3  ;;  %v910_v8 = vsel %vm782_vm10, %v594_v58, %v846_v0  ;;  %v912_v9 = vsel %vm784_vm11, %v707_v59, %v848_v1  ;;  %vm785_vm12 = vcmp.ge.f32.partialorder %v596_v4, 0.0  ;;  %v849_v12 = vmul.f32 0.1, %v596_v4 }
 0x214   :  { %974 = vst [vmem:[#allocation9 + $0x48] sm:$0xff] %v910_v8  ;;  %976 = vst [vmem:[#allocation9 + $0x58] sm:$0xff] %v912_v9  ;;  %vm787_vm13 = vcmp.ge.f32.partialorder %v709_v5, 0.0  ;;  %v851_v13 = vmul.f32 0.1, %v709_v5  ;;  %vm786_vm14 = vcmp.ge.f32.partialorder %v598_v10, 0.0 }
 0x215   :  { %v850_v14 = vmul.f32 0.1, %v598_v10  ;;  %vm788_vm15 = vcmp.ge.f32.partialorder %v711_v11, 0.0  ;;  %v852_v15 = vmul.f32 0.1, %v711_v11  ;;  %v913_v20 = vsel %vm785_vm12, %v596_v4, %v849_v12  ;;  %v601_v22 = vpop.f32.mrb[8].mxu1 }
 0x216   :  { %v915_v21 = vsel %vm787_vm13, %v709_v5, %v851_v13  ;;  %v714_v23 = vpop.f32.mrb[24].mxu0  ;;  %977 = vst [vmem:[#allocation9 + $0x60] sm:$0xff] %v913_v20  ;;  %v602_v26 = vadd.f32 %v601_v22, %v1505_v16  ;;  %v603_v28 = vpop.f32.mrb[9].mxu1 }
 0x217   :  { %979 = vst [vmem:[#allocation9 + $0x70] sm:$0xff] %v915_v21  ;;  %v914_v24 = vsel %vm786_vm14, %v598_v10, %v850_v14  ;;  %v916_v25 = vsel %vm788_vm15, %v711_v11, %v852_v15  ;;  %v715_v27 = vadd.f32 %v714_v23, %v1507_v17  ;;  %v716_v29 = vpop.f32.mrb[25].mxu0  ;;  %v604_v30 = vadd.f32 %v603_v28, %v1509_v18  ;;  %v605_v32 = vpop.f32.mrb[10].mxu1 }
 0x218   :  { %978 = vst [vmem:[#allocation9 + $0x68] sm:$0xff] %v914_v24  ;;  %980 = vst [vmem:[#allocation9 + $0x78] sm:$0xff] %v916_v25  ;;  %v717_v31 = vadd.f32 %v716_v29, %v1511_v19  ;;  %v718_v33 = vpop.f32.mrb[26].mxu0  ;;  %vm789_vm0 = vcmp.ge.f32.partialorder %v602_v26, 0.0  ;;  %v853_v34 = vmul.f32 0.1, %v602_v26  ;;  %v606_v40 = vadd.f32 %v605_v32, %v1505_v16 }
 0x219   :  { %vm791_vm1 = vcmp.ge.f32.partialorder %v715_v27, 0.0  ;;  %v855_v35 = vmul.f32 0.1, %v715_v27  ;;  %vm790_vm2 = vcmp.ge.f32.partialorder %v604_v30, 0.0  ;;  %v854_v36 = vmul.f32 0.1, %v604_v30 }
 0x21a   :  { %vm792_vm3 = vcmp.ge.f32.partialorder %v717_v31, 0.0  ;;  %v856_v37 = vmul.f32 0.1, %v717_v31  ;;  %v917_v38 = vsel %vm789_vm0, %v602_v26, %v853_v34  ;;  %v719_v41 = vadd.f32 %v718_v33, %v1507_v17  ;;  %v607_v42 = vpop.f32.mrb[11].mxu1  ;;  %v720_v43 = vpop.f32.mrb[27].mxu0 }
 0x21b   :  { %v919_v39 = vsel %vm791_vm1, %v715_v27, %v855_v35  ;;  %981 = vst [vmem:[#allocation9 + $0x80] sm:$0xff] %v917_v38  ;;  %v918_v44 = vsel %vm790_vm2, %v604_v30, %v854_v36  ;;  %v608_v46 = vadd.f32 %v607_v42, %v1509_v18  ;;  %v721_v47 = vadd.f32 %v720_v43, %v1511_v19 }
 0x21c   :  { %983 = vst [vmem:[#allocation9 + $0x90] sm:$0xff] %v919_v39  ;;  %v920_v45 = vsel %vm792_vm3, %v717_v31, %v856_v37  ;;  %v611_v48 = vpop.f32.mrb[12].mxu1  ;;  %v724_v49 = vpop.f32.mrb[28].mxu0  ;;  %982 = vst [vmem:[#allocation9 + $0x88] sm:$0xff] %v918_v44  ;;  %vm793_vm4 = vcmp.ge.f32.partialorder %v606_v40, 0.0  ;;  %vm795_vm5 = vcmp.ge.f32.partialorder %v719_v41, 0.0 }
 0x21d   :  { %984 = vst [vmem:[#allocation9 + $0x98] sm:$0xff] %v920_v45  ;;  %v857_v50 = vmul.f32 0.1, %v606_v40  ;;  %v859_v51 = vmul.f32 0.1, %v719_v41  ;;  %vm794_vm6 = vcmp.ge.f32.partialorder %v608_v46, 0.0  ;;  %v612_v56 = vadd.f32 %v611_v48, %v1505_v16 }
 0x21e   :  { %v858_v52 = vmul.f32 0.1, %v608_v46  ;;  %vm796_vm7 = vcmp.ge.f32.partialorder %v721_v47, 0.0  ;;  %v860_v53 = vmul.f32 0.1, %v721_v47  ;;  %v725_v57 = vadd.f32 %v724_v49, %v1507_v17  ;;  %v613_v58 = vpop.f32.mrb[13].mxu1 }
 0x21f   :  { %v921_v54 = vsel %vm793_vm4, %v606_v40, %v857_v50  ;;  %v923_v55 = vsel %vm795_vm5, %v719_v41, %v859_v51  ;;  %v726_v59 = vpop.f32.mrb[29].mxu0  ;;  %v614_v62 = vadd.f32 %v613_v58, %v1509_v18  ;;  %v615_v0 = vpop.f32.mrb[14].mxu1  ;;  %vm797_vm8 = vcmp.ge.f32.partialorder %v612_v56, 0.0 }
 0x220   :  { %985 = vst [vmem:[#allocation9 + $0xa0] sm:$0xff] %v921_v54  ;;  %987 = vst [vmem:[#allocation9 + $0xb0] sm:$0xff] %v923_v55  ;;  %v922_v60 = vsel %vm794_vm6, %v608_v46, %v858_v52  ;;  %v924_v61 = vsel %vm796_vm7, %v721_v47, %v860_v53  ;;  %v727_v63 = vadd.f32 %v726_v59, %v1511_v19  ;;  %v728_v1 = vpop.f32.mrb[30].mxu0  ;;  %v861_v2 = vmul.f32 0.1, %v612_v56  ;;  %v617_v10 = vpop.f32.mrb[15].mxu1 }
 0x221   :  { %986 = vst [vmem:[#allocation9 + $0xa8] sm:$0xff] %v922_v60  ;;  %988 = vst [vmem:[#allocation9 + $0xb8] sm:$0xff] %v924_v61  ;;  %vm799_vm9 = vcmp.ge.f32.partialorder %v725_v57, 0.0  ;;  %v863_v3 = vmul.f32 0.1, %v725_v57  ;;  %vm798_vm10 = vcmp.ge.f32.partialorder %v614_v62, 0.0  ;;  %v616_v8 = vadd.f32 %v615_v0, %v1505_v16 }
 0x222   :  { %v862_v4 = vmul.f32 0.1, %v614_v62  ;;  %vm800_vm11 = vcmp.ge.f32.partialorder %v727_v63, 0.0  ;;  %v864_v5 = vmul.f32 0.1, %v727_v63  ;;  %v925_v6 = vsel %vm797_vm8, %v612_v56, %v861_v2  ;;  %v730_v11 = vpop.f32.mrb[31].mxu0 }
 0x223   :  { %v927_v7 = vsel %vm799_vm9, %v725_v57, %v863_v3  ;;  %v729_v9 = vadd.f32 %v728_v1, %v1507_v17  ;;  %989 = vst [vmem:[#allocation9 + $0xc0] sm:$0xff] %v925_v6  ;;  %v618_v14 = vadd.f32 %v617_v10, %v1509_v18  ;;  %v731_v15 = vadd.f32 %v730_v11, %v1511_v19 }
 0x224   :  { %991 = vst [vmem:[#allocation9 + $0xd0] sm:$0xff] %v927_v7  ;;  %v926_v12 = vsel %vm798_vm10, %v614_v62, %v862_v4  ;;  %v928_v13 = vsel %vm800_vm11, %v727_v63, %v864_v5  ;;  %v621_v20 = vpop.f32.mrb[16].mxu1  ;;  %v734_v21 = vpop.f32.mrb[32].mxu0  ;;  %vm801_vm12 = vcmp.ge.f32.partialorder %v616_v8, 0.0  ;;  %v865_v22 = vmul.f32 0.1, %v616_v8 }
 0x225   :  { %990 = vst [vmem:[#allocation9 + $0xc8] sm:$0xff] %v926_v12  ;;  %992 = vst [vmem:[#allocation9 + $0xd8] sm:$0xff] %v928_v13  ;;  %vm803_vm13 = vcmp.ge.f32.partialorder %v729_v9, 0.0  ;;  %v867_v23 = vmul.f32 0.1, %v729_v9  ;;  %vm802_vm14 = vcmp.ge.f32.partialorder %v618_v14, 0.0  ;;  %v622_v28 = vadd.f32 %v621_v20, %v1505_v16 }
 0x226   :  { %v866_v24 = vmul.f32 0.1, %v618_v14  ;;  %vm804_vm15 = vcmp.ge.f32.partialorder %v731_v15, 0.0  ;;  %v868_v25 = vmul.f32 0.1, %v731_v15  ;;  %v929_v26 = vsel %vm801_vm12, %v616_v8, %v865_v22  ;;  %v623_v30 = vpop.f32.mrb[17].mxu1 }
 0x227   :  { %v931_v27 = vsel %vm803_vm13, %v729_v9, %v867_v23  ;;  %v735_v29 = vadd.f32 %v734_v21, %v1507_v17  ;;  %v736_v31 = vpop.f32.mrb[33].mxu0  ;;  %993 = vst [vmem:[#allocation9 + $0xe0] sm:$0xff] %v929_v26  ;;  %v624_v34 = vadd.f32 %v623_v30, %v1509_v18  ;;  %v625_v36 = vpop.f32.mrb[18].mxu1  ;;  %vm805_vm0 = vcmp.ge.f32.partialorder %v622_v28, 0.0 }
 0x228   :  { %995 = vst [vmem:[#allocation9 + $0xf0] sm:$0xff] %v931_v27  ;;  %v930_v32 = vsel %vm802_vm14, %v618_v14, %v866_v24  ;;  %v932_v33 = vsel %vm804_vm15, %v731_v15, %v868_v25  ;;  %v737_v35 = vadd.f32 %v736_v31, %v1511_v19  ;;  %v738_v37 = vpop.f32.mrb[34].mxu0  ;;  %v869_v38 = vmul.f32 0.1, %v622_v28  ;;  %v627_v46 = vpop.f32.mrb[19].mxu1 }
 0x229   :  { %994 = vst [vmem:[#allocation9 + $0xe8] sm:$0xff] %v930_v32  ;;  %996 = vst [vmem:[#allocation9 + $0xf8] sm:$0xff] %v932_v33  ;;  %vm807_vm1 = vcmp.ge.f32.partialorder %v735_v29, 0.0  ;;  %v871_v39 = vmul.f32 0.1, %v735_v29  ;;  %vm806_vm2 = vcmp.ge.f32.partialorder %v624_v34, 0.0  ;;  %v626_v44 = vadd.f32 %v625_v36, %v1505_v16 }
 0x22a   :  { %v870_v40 = vmul.f32 0.1, %v624_v34  ;;  %vm808_vm3 = vcmp.ge.f32.partialorder %v737_v35, 0.0  ;;  %v872_v41 = vmul.f32 0.1, %v737_v35  ;;  %v933_v42 = vsel %vm805_vm0, %v622_v28, %v869_v38  ;;  %v740_v47 = vpop.f32.mrb[35].mxu0 }
 0x22b   :  { %v935_v43 = vsel %vm807_vm1, %v735_v29, %v871_v39  ;;  %v739_v45 = vadd.f32 %v738_v37, %v1507_v17  ;;  %997 = vst [vmem:[#allocation9 + $0x100] sm:$0xff] %v933_v42  ;;  %v628_v50 = vadd.f32 %v627_v46, %v1509_v18  ;;  %v741_v51 = vadd.f32 %v740_v47, %v1511_v19 }
 0x22c   :  { %999 = vst [vmem:[#allocation9 + $0x110] sm:$0xff] %v935_v43  ;;  %v934_v48 = vsel %vm806_vm2, %v624_v34, %v870_v40  ;;  %v936_v49 = vsel %vm808_vm3, %v737_v35, %v872_v41  ;;  %v631_v52 = vpop.f32.mrb[20].mxu1  ;;  %v744_v53 = vpop.f32.mrb[36].mxu0  ;;  %vm809_vm4 = vcmp.ge.f32.partialorder %v626_v44, 0.0  ;;  %v873_v54 = vmul.f32 0.1, %v626_v44 }
 0x22d   :  { %998 = vst [vmem:[#allocation9 + $0x108] sm:$0xff] %v934_v48  ;;  %1000 = vst [vmem:[#allocation9 + $0x118] sm:$0xff] %v936_v49  ;;  %vm811_vm5 = vcmp.ge.f32.partialorder %v739_v45, 0.0  ;;  %v875_v55 = vmul.f32 0.1, %v739_v45  ;;  %vm810_vm6 = vcmp.ge.f32.partialorder %v628_v50, 0.0  ;;  %v632_v60 = vadd.f32 %v631_v52, %v1505_v16 }
 0x22e   :  { %v874_v56 = vmul.f32 0.1, %v628_v50  ;;  %vm812_vm7 = vcmp.ge.f32.partialorder %v741_v51, 0.0  ;;  %v876_v57 = vmul.f32 0.1, %v741_v51  ;;  %v937_v58 = vsel %vm809_vm4, %v626_v44, %v873_v54  ;;  %v633_v62 = vpop.f32.mrb[21].mxu1 }
 0x22f   :  { %v939_v59 = vsel %vm811_vm5, %v739_v45, %v875_v55  ;;  %v745_v61 = vadd.f32 %v744_v53, %v1507_v17  ;;  %v746_v63 = vpop.f32.mrb[37].mxu0  ;;  %1001 = vst [vmem:[#allocation9 + $0x120] sm:$0xff] %v937_v58  ;;  %v634_v2 = vadd.f32 %v633_v62, %v1509_v18  ;;  %v635_v4 = vpop.f32.mrb[22].mxu1  ;;  %vm813_vm8 = vcmp.ge.f32.partialorder %v632_v60, 0.0 }
 0x230   :  { %1003 = vst [vmem:[#allocation9 + $0x130] sm:$0xff] %v939_v59  ;;  %v938_v0 = vsel %vm810_vm6, %v628_v50, %v874_v56  ;;  %v940_v1 = vsel %vm812_vm7, %v741_v51, %v876_v57  ;;  %v747_v3 = vadd.f32 %v746_v63, %v1511_v19  ;;  %v748_v5 = vpop.f32.mrb[38].mxu0  ;;  %v877_v6 = vmul.f32 0.1, %v632_v60  ;;  %v637_v14 = vpop.f32.mrb[23].mxu1 }
 0x231   :  { %1002 = vst [vmem:[#allocation9 + $0x128] sm:$0xff] %v938_v0  ;;  %1004 = vst [vmem:[#allocation9 + $0x138] sm:$0xff] %v940_v1  ;;  %vm815_vm9 = vcmp.ge.f32.partialorder %v745_v61, 0.0  ;;  %v879_v7 = vmul.f32 0.1, %v745_v61  ;;  %vm814_vm10 = vcmp.ge.f32.partialorder %v634_v2, 0.0  ;;  %v636_v12 = vadd.f32 %v635_v4, %v1505_v16 }
 0x232   :  { %v878_v8 = vmul.f32 0.1, %v634_v2  ;;  %vm816_vm11 = vcmp.ge.f32.partialorder %v747_v3, 0.0  ;;  %v880_v9 = vmul.f32 0.1, %v747_v3  ;;  %v941_v10 = vsel %vm813_vm8, %v632_v60, %v877_v6  ;;  %v750_v15 = vpop.f32.mrb[39].mxu0 }
 0x233   :  { %v943_v11 = vsel %vm815_vm9, %v745_v61, %v879_v7  ;;  %v749_v13 = vadd.f32 %v748_v5, %v1507_v17  ;;  %1005 = vst [vmem:[#allocation9 + $0x140] sm:$0xff] %v941_v10  ;;  %v638_v22 = vadd.f32 %v637_v14, %v1509_v18  ;;  %v751_v23 = vadd.f32 %v750_v15, %v1511_v19 }
 0x234   :  { %1007 = vst [vmem:[#allocation9 + $0x150] sm:$0xff] %v943_v11  ;;  %v942_v20 = vsel %vm814_vm10, %v634_v2, %v878_v8  ;;  %v944_v21 = vsel %vm816_vm11, %v747_v3, %v880_v9  ;;  %v641_v24 = vpop.f32.mrb[24].mxu1  ;;  %vm817_vm12 = vcmp.ge.f32.partialorder %v636_v12, 0.0  ;;  %v881_v25 = vmul.f32 0.1, %v636_v12 }
 0x235   :  { %1006 = vst [vmem:[#allocation9 + $0x148] sm:$0xff] %v942_v20  ;;  %1008 = vst [vmem:[#allocation9 + $0x158] sm:$0xff] %v944_v21  ;;  %vm819_vm13 = vcmp.ge.f32.partialorder %v749_v13, 0.0  ;;  %v883_v26 = vmul.f32 0.1, %v749_v13  ;;  %vm818_vm14 = vcmp.ge.f32.partialorder %v638_v22, 0.0  ;;  %v642_v31 = vadd.f32 %v641_v24, %v1505_v16 }
 0x236   :  { %v882_v27 = vmul.f32 0.1, %v638_v22  ;;  %vm820_vm15 = vcmp.ge.f32.partialorder %v751_v23, 0.0  ;;  %v884_v28 = vmul.f32 0.1, %v751_v23  ;;  %v945_v29 = vsel %vm817_vm12, %v636_v12, %v881_v25  ;;  %v643_v32 = vpop.f32.mrb[25].mxu1 }
 0x237   :  { %v947_v30 = vsel %vm819_vm13, %v749_v13, %v883_v26  ;;  %1009 = vst [vmem:[#allocation9 + $0x160] sm:$0xff] %v945_v29  ;;  %v644_v35 = vadd.f32 %v643_v32, %v1509_v18  ;;  %v645_v36 = vpop.f32.mrb[26].mxu1  ;;  %vm821_vm0 = vcmp.ge.f32.partialorder %v642_v31, 0.0  ;;  %v885_v37 = vmul.f32 0.1, %v642_v31 }
 0x238   :  { %1011 = vst [vmem:[#allocation9 + $0x170] sm:$0xff] %v947_v30  ;;  %v946_v33 = vsel %vm818_vm14, %v638_v22, %v882_v27  ;;  %v948_v34 = vsel %vm820_vm15, %v751_v23, %v884_v28  ;;  %v646_v38 = vadd.f32 %v645_v36, %v1505_v16  ;;  %v647_v39 = vpop.f32.mrb[27].mxu1 }
 0x239   :  { %1010 = vst [vmem:[#allocation9 + $0x168] sm:$0xff] %v946_v33  ;;  %1012 = vst [vmem:[#allocation9 + $0x178] sm:$0xff] %v948_v34  ;;  %vm822_vm1 = vcmp.ge.f32.partialorder %v644_v35, 0.0  ;;  %v886_v40 = vmul.f32 0.1, %v644_v35  ;;  %v648_v41 = vadd.f32 %v647_v39, %v1509_v18  ;;  %v949_v42 = vsel %vm821_vm0, %v642_v31, %v885_v37 }
 0x23a   :  { %vm825_vm2 = vcmp.ge.f32.partialorder %v646_v38, 0.0  ;;  %v889_v43 = vmul.f32 0.1, %v646_v38  ;;  %1013 = vst [vmem:[#allocation9 + $0x180] sm:$0xff] %v949_v42 }
 0x23b   :  { %v950_v44 = vsel %vm822_vm1, %v644_v35, %v886_v40  ;;  %vm826_vm3 = vcmp.ge.f32.partialorder %v648_v41, 0.0  ;;  %v890_v45 = vmul.f32 0.1, %v648_v41 }
 0x23c   :  { %v651_v46 = vpop.f32.mrb[28].mxu1  ;;  %1014 = vst [vmem:[#allocation9 + $0x188] sm:$0xff] %v950_v44  ;;  %v953_v47 = vsel %vm825_vm2, %v646_v38, %v889_v43 }
 0x23d   :  { %v652_v48 = vadd.f32 %v651_v46, %v1505_v16  ;;  %v653_v49 = vpop.f32.mrb[29].mxu1  ;;  %1017 = vst [vmem:[#allocation9 + $0x1a0] sm:$0xff] %v953_v47  ;;  %v954_v50 = vsel %vm826_vm3, %v648_v41, %v890_v45 }
 0x23e   :  { %v654_v51 = vadd.f32 %v653_v49, %v1509_v18  ;;  %v655_v52 = vpop.f32.mrb[30].mxu1  ;;  %1018 = vst [vmem:[#allocation9 + $0x1a8] sm:$0xff] %v954_v50 }
 0x23f   :  { %vm829_vm4 = vcmp.ge.f32.partialorder %v652_v48, 0.0  ;;  %v893_v53 = vmul.f32 0.1, %v652_v48  ;;  %v656_v54 = vadd.f32 %v655_v52, %v1505_v16  ;;  %v657_v55 = vpop.f32.mrb[31].mxu1 }
 0x240   :  { %vm830_vm5 = vcmp.ge.f32.partialorder %v654_v51, 0.0  ;;  %v894_v56 = vmul.f32 0.1, %v654_v51  ;;  %v658_v57 = vadd.f32 %v657_v55, %v1509_v18 }
 0x241   :  { %v957_v58 = vsel %vm829_vm4, %v652_v48, %v893_v53  ;;  %vm833_vm6 = vcmp.ge.f32.partialorder %v656_v54, 0.0  ;;  %v897_v59 = vmul.f32 0.1, %v656_v54 }
 0x242   :  { %1021 = vst [vmem:[#allocation9 + $0x1c0] sm:$0xff] %v957_v58  ;;  %v958_v60 = vsel %vm830_vm5, %v654_v51, %v894_v56  ;;  %vm834_vm7 = vcmp.ge.f32.partialorder %v658_v57, 0.0  ;;  %v898_v61 = vmul.f32 0.1, %v658_v57 }
 0x243   :  { %1022 = vst [vmem:[#allocation9 + $0x1c8] sm:$0xff] %v958_v60  ;;  %v961_v62 = vsel %vm833_vm6, %v656_v54, %v897_v59 }
 0x244   :  { %1025 = vst [vmem:[#allocation9 + $0x1e0] sm:$0xff] %v961_v62  ;;  %v962_v63 = vsel %vm834_vm7, %v658_v57, %v898_v61  ;;  %v754_v0 = vpop.f32.mrb[32].mxu1 }
 0x245   :  { %1026 = vst [vmem:[#allocation9 + $0x1e8] sm:$0xff] %v962_v63  ;;  %v755_v16 = vadd.f32 %v754_v0, %v1507_v17  ;;  %v756_v1 = vpop.f32.mrb[33].mxu1 }
 0x246   :  { %v757_v2 = vadd.f32 %v756_v1, %v1511_v19  ;;  %v758_v3 = vpop.f32.mrb[34].mxu1 }
 0x247   :  { %vm823_vm8 = vcmp.ge.f32.partialorder %v755_v16, 0.0  ;;  %v887_v18 = vmul.f32 0.1, %v755_v16  ;;  %v759_v4 = vadd.f32 %v758_v3, %v1507_v17  ;;  %v760_v5 = vpop.f32.mrb[35].mxu1 }
 0x248   :  { %vm824_vm9 = vcmp.ge.f32.partialorder %v757_v2, 0.0  ;;  %v888_v6 = vmul.f32 0.1, %v757_v2  ;;  %v761_v7 = vadd.f32 %v760_v5, %v1511_v19 }
 0x249   :  { %v951_v8 = vsel %vm823_vm8, %v755_v16, %v887_v18  ;;  %vm827_vm10 = vcmp.ge.f32.partialorder %v759_v4, 0.0  ;;  %v891_v9 = vmul.f32 0.1, %v759_v4 }
 0x24a   :  { %1015 = vst [vmem:[#allocation9 + $0x190] sm:$0xff] %v951_v8  ;;  %v952_v10 = vsel %vm824_vm9, %v757_v2, %v888_v6  ;;  %vm828_vm11 = vcmp.ge.f32.partialorder %v761_v7, 0.0  ;;  %v892_v11 = vmul.f32 0.1, %v761_v7 }
 0x24b   :  { %1016 = vst [vmem:[#allocation9 + $0x198] sm:$0xff] %v952_v10  ;;  %v955_v12 = vsel %vm827_vm10, %v759_v4, %v891_v9 }
 0x24c   :  { %1019 = vst [vmem:[#allocation9 + $0x1b0] sm:$0xff] %v955_v12  ;;  %v956_v13 = vsel %vm828_vm11, %v761_v7, %v892_v11  ;;  %v764_v14 = vpop.f32.mrb[36].mxu1 }
 0x24d   :  { %1020 = vst [vmem:[#allocation9 + $0x1b8] sm:$0xff] %v956_v13  ;;  %v765_v15 = vadd.f32 %v764_v14, %v1507_v17  ;;  %v766_v20 = vpop.f32.mrb[37].mxu1 }
 0x24e   :  { %v767_v21 = vadd.f32 %v766_v20, %v1511_v19  ;;  %v768_v22 = vpop.f32.mrb[38].mxu1 }
 0x24f   :  { %vm831_vm12 = vcmp.ge.f32.partialorder %v765_v15, 0.0  ;;  %v895_v23 = vmul.f32 0.1, %v765_v15  ;;  %v769_v24 = vadd.f32 %v768_v22, %v1507_v17  ;;  %v770_v25 = vpop.f32.mrb[39].mxu1 }
 0x250   :  { %vm832_vm13 = vcmp.ge.f32.partialorder %v767_v21, 0.0  ;;  %v896_v26 = vmul.f32 0.1, %v767_v21  ;;  %v771_v27 = vadd.f32 %v770_v25, %v1511_v19 }
 0x251   :  { %v959_v28 = vsel %vm831_vm12, %v765_v15, %v895_v23  ;;  %vm835_vm14 = vcmp.ge.f32.partialorder %v769_v24, 0.0  ;;  %v899_v29 = vmul.f32 0.1, %v769_v24 }
 0x252   :  { %1023 = vst [vmem:[#allocation9 + $0x1d0] sm:$0xff] %v959_v28  ;;  %v960_v30 = vsel %vm832_vm13, %v767_v21, %v896_v26  ;;  %vm836_vm15 = vcmp.ge.f32.partialorder %v771_v27, 0.0  ;;  %v900_v31 = vmul.f32 0.1, %v771_v27 }
 0x253   :  { %1024 = vst [vmem:[#allocation9 + $0x1d8] sm:$0xff] %v960_v30  ;;  %v963_v32 = vsel %vm835_vm14, %v769_v24, %v899_v29 }
 0x254   :  { %1027 = vst [vmem:[#allocation9 + $0x1f0] sm:$0xff] %v963_v32  ;;  %v964_v33 = vsel %vm836_vm15, %v771_v27, %v900_v31 }
 0x255   :  { %1028 = vst [vmem:[#allocation9 + $0x1f8] sm:$0xff] %v964_v33 }
 0x256   :  { %1334 = shalt.err (!%p1331_p0)
}
 0x257   :  { %s1335_s6 = scalar_lea.hbm %s1593_s4, 8192 }
 0x258   :  { %p1336_p1 = scmp.ne.s32.totalorder %s1593_s4, %s1335_s6  ;;  %p1339_p2 = scmp.lt.u32.totalorder %s1335_s6, %s1593_s4 }
 0x25a   :  { %p1341_p3 = pnand %p1339_p2, %p1336_p1 }
 0x25c   :  { %1344 = shalt.err (!%p1341_p3)
}
 0x25d   :  { %s1360_s11 = smov 512   ;;  %s1361_s12 = smov 32  }
 0x25e   :  { %1040 = dma.vmem_to_hbm [thread:$0]  %s1035_s28, 8192, %s1593_s4, [#allocation5], %s1360_s11, %s1360_s11, %s1361_s12  }
 0x25f   :  { %1349 = dma.done.wait [#allocation5], 8192  }
 0x260   :  { %1350 = vsyncadd [#allocation5], 4294959104 }
 0x261   :  { %1044 = vsyncpa [#allocation4], 1 }
 0x262   :  { %1045 = vsyncpa [#allocation7], 1 }
 0x263   :  { %1046 = vsyncpa [#allocation5], 1 }

</bundles_post_ra>
